<compile_context>
chip_gen: v7x
topology: tpu7x:2x2x1
jax: 0.10.0
libtpu: 0.0.40
codegen_flags: <defaults>
</compile_context>

<pallas_src>
import functools
import math

import jax
import jax.numpy as jnp
from jax.experimental import pallas as pl
from jax.experimental.pallas import tpu as pltpu


_INV_SQRT2 = 1.0 / math.sqrt(2.0)


def _round_up(x, m):
    return ((x + m - 1) // m) * m


def _sublane(dtype):
    # native second-to-last tile: 8 for f32, 16 for bf16, 32 for int8/fp8
    return max(8, 32 // jnp.dtype(dtype).itemsize)


def _lane_pad(d):
    # 256-align larger dims for the 256x256 MXU on v6e/v7x; small dims stay 128
    return _round_up(d, 256) if d >= 256 else _round_up(d, 128)


def _vmem_capacity_bytes():
    try:
        info = pltpu.get_tpu_info()
        cap = getattr(info, "vmem_capacity_bytes", None)
        if cap:
            return int(cap)
    except Exception:
        pass
    return 64 * 1024 * 1024  # conservative: v7x per-TensorCore VMEM


def _choose_tm(M, tm_max, sublane):
    """Token tile: large (arithmetic intensity), low padding waste, >=2 tiles."""
    M_al = _round_up(max(M, 1), sublane)
    cap = min(tm_max, M_al)
    cands = []
    c = sublane
    while c <= cap:
        cands.append(c)
        c *= 2
    if M_al <= tm_max:
        cands.append(M_al)
    cands = sorted(set(cands), reverse=True)

    def waste(t):
        return _round_up(M, t) - M

    best = None
    for t in cands:                      # largest tile with <=12.5% padded rows
        if waste(t) * 8 <= M:
            best = t
            break
    if best is None:
        best = min(cands, key=waste)
    # guarantee >=2 tiles on the "parallel" axis so both v7x TCs get work
    if _round_up(M, best) // best < 2 and M > sublane:
        best = max(sublane, _round_up((M + 1) // 2, sublane))
    return best


def _gelu_exact_f32(h):
    # exact erf-based GELU (matches the PyTorch reference)
    return h * 0.5 * (1.0 + jax.lax.erf(h * _INV_SQRT2))


# ----------------------------- kernels --------------------------------------


def _ffn_kernel_resident(x_ref, w1_ref, b1_ref, w2_ref, b2_ref, o_ref, *,
                         dot_kwargs):
    """Fast path: whole W1/W2 resident in VMEM; single grid axis over tokens."""
    h = jnp.dot(x_ref[...], w1_ref[...],
                preferred_element_type=jnp.float32, **dot_kwargs)
    h = _gelu_exact_f32(h + b1_ref[...].astype(jnp.float32))
    y = jnp.dot(h.astype(w2_ref.dtype), w2_ref[...],
                preferred_element_type=jnp.float32, **dot_kwargs)
    o_ref[...] = (y + b2_ref[...].astype(jnp.float32)).astype(o_ref.dtype)


def _ffn_kernel_ktiled_out_acc(x_ref, w1_ref, b1_ref, w2_ref, b2_ref, o_ref, *,
                               dot_kwargs):
    """d_ff-tiled path, f32 output: accumulate directly into o_ref (no scratch)."""
    k = pl.program_id(1)

    @pl.when(k == 0)
    def _():
        o_ref[...] = jnp.zeros_like(o_ref)

    h = jnp.dot(x_ref[...], w1_ref[...],
                preferred_element_type=jnp.float32, **dot_kwargs)
    h = _gelu_exact_f32(h + b1_ref[...].astype(jnp.float32))
    o_ref[...] += jnp.dot(h.astype(w2_ref.dtype), w2_ref[...],
                          preferred_element_type=jnp.float32, **dot_kwargs)

    @pl.when(k == pl.num_programs(1) - 1)
    def _():
        o_ref[...] += b2_ref[...].astype(jnp.float32)


def _ffn_kernel_ktiled_scratch(x_ref, w1_ref, b1_ref, w2_ref, b2_ref, o_ref,
                               acc_ref, *, dot_kwargs):
    """d_ff-tiled path, non-f32 output: f32 VMEM scratch accumulator."""
    k = pl.program_id(1)

    @pl.when(k == 0)
    def _():
        acc_ref[...] = jnp.zeros_like(acc_ref)

    h = jnp.dot(x_ref[...], w1_ref[...],
                preferred_element_type=jnp.float32, **dot_kwargs)
    h = _gelu_exact_f32(h + b1_ref[...].astype(jnp.float32))
    acc_ref[...] += jnp.dot(h.astype(w2_ref.dtype), w2_ref[...],
                            preferred_element_type=jnp.float32, **dot_kwargs)

    @pl.when(k == pl.num_programs(1) - 1)
    def _():
        o_ref[...] = (acc_ref[...]
                      + b2_ref[...].astype(jnp.float32)).astype(o_ref.dtype)


# ----------------------------- wrapper ---------------------------------------


def prepare_ffn_params(w1, b1, w2, b2, *, mxu_dtype=None):
    """One-time padding (and optional bf16 cast) of the FFN parameters.

    Done OUTSIDE the per-call hot path so the full-weight HBM copy is not paid
    on every forward.  w1: [d_model, d_ff], w2: [d_ff, d_model].
    """
    d_model, d_ff = w1.shape
    D_pad = _lane_pad(d_model)
    F_pad = _lane_pad(d_ff)
    wdt = w1.dtype if mxu_dtype is None else jnp.dtype(mxu_dtype)
    w1p = jnp.pad(w1.astype(wdt), ((0, D_pad - d_model), (0, F_pad - d_ff)))
    w2p = jnp.pad(w2.astype(wdt), ((0, F_pad - d_ff), (0, D_pad - d_model)))
    b1p = jnp.pad(b1.astype(jnp.float32), (0, F_pad - d_ff)).reshape(1, F_pad)
    b2p = jnp.pad(b2.astype(jnp.float32), (0, D_pad - d_model)).reshape(1, D_pad)
    return w1p, b1p, w2p, b2p


@functools.partial(jax.jit, static_argnames=("tm_max", "precision"))
def poswise_ffn(x, w1p, b1p, w2p, b2p, *, tm_max=512, precision=None):
    """Position-wise FFN: gelu(x @ W1 + b1) @ W2 + b2 with exact (erf) GELU.

    x: [..., d_model]; (w1p, b1p, w2p, b2p) come from prepare_ffn_params.
    """
    lead = x.shape[:-1]
    d_model = x.shape[-1]
    D_pad, F_pad = w1p.shape
    assert w2p.shape == (F_pad, D_pad)
    M = int(math.prod(lead)) if lead else 1

    out_dtype = x.dtype
    compute_dtype = w1p.dtype
    c_item = jnp.dtype(compute_dtype).itemsize
    o_item = jnp.dtype(out_dtype).itemsize
    w_item = c_item

    sub = _sublane(compute_dtype)
    tm = _choose_tm(M, tm_max, sub)
    M_pad = _round_up(M, tm)
    n_m = M_pad // tm

    x2d = x.reshape(M, d_model).astype(compute_dtype)
    if (M_pad, D_pad) != (M, d_model):
        x2d = jnp.pad(x2d, ((0, M_pad - M), (0, D_pad - d_model)))

    cap = _vmem_capacity_bytes()
    budget = min(int(cap * 0.75), 100 * 1024 * 1024)

    dot_kwargs = {} if precision is None else {"precision": precision}

    # conservative fast-path footprint (assume everything is double-buffered)
    resident_bytes = (2 * tm * D_pad * c_item                        # x tiles
                      + 2 * tm * D_pad * o_item                      # out tiles
                      + 2 * (D_pad * F_pad + F_pad * D_pad) * w_item  # W1, W2
                      + 2 * (F_pad + D_pad) * 4)                     # biases

    if resident_bytes <= budget:
        # ---- fast path: weights resident, no d_ff axis, no accumulator ----
        grid = (n_m,)
        kernel = functools.partial(_ffn_kernel_resident, dot_kwargs=dot_kwargs)
        in_specs = [
            pl.BlockSpec((tm, D_pad), lambda i: (i, 0)),      # x tile
            pl.BlockSpec((D_pad, F_pad), lambda i: (0, 0)),   # W1 (resident)
            pl.BlockSpec((1, F_pad), lambda i: (0, 0)),       # b1
            pl.BlockSpec((F_pad, D_pad), lambda i: (0, 0)),   # W2 (resident)
            pl.BlockSpec((1, D_pad), lambda i: (0, 0)),       # b2
        ]
        out_specs = pl.BlockSpec((tm, D_pad), lambda i: (i, 0))
        scratch_shapes = []
        dim_sem = ("parallel",)
        w_stream_factor = 1
    else:
        # ---- d_ff-tiled path: derive tf from the VMEM budget ----
        use_out_acc = out_dtype == jnp.float32
        acc_bytes = 0 if use_out_acc else tm * D_pad * 4
        fixed = (2 * tm * D_pad * c_item      # x tile (resident across k)
                 + 2 * tm * D_pad * o_item    # out tile (resident across k)
                 + 2 * D_pad * 4              # b2
                 + acc_bytes)
        per_tf = 2 * 2 * D_pad * w_item + 2 * 4  # W1 + W2 slabs (x2 bufs) + b1
        tf_budget = max(128, (budget - fixed) // per_tf)
        # largest 128-multiple divisor of F_pad that fits the budget
        q = F_pad // 128
        best_d = 1
        for d in range(1, q + 1):
            if q % d == 0 and d * 128 <= tf_budget:
                best_d = d
        tf = best_d * 128
        n_k = F_pad // tf

        grid = (n_m, n_k)
        in_specs = [
            pl.BlockSpec((tm, D_pad), lambda i, k: (i, 0)),   # x tile
            pl.BlockSpec((D_pad, tf), lambda i, k: (0, k)),   # W1 slab
            pl.BlockSpec((1, tf), lambda i, k: (0, k)),       # b1 slab
            pl.BlockSpec((tf, D_pad), lambda i, k: (k, 0)),   # W2 slab
            pl.BlockSpec((1, D_pad), lambda i, k: (0, 0)),    # b2
        ]
        out_specs = pl.BlockSpec((tm, D_pad), lambda i, k: (i, 0))
        if use_out_acc:
            kernel = functools.partial(_ffn_kernel_ktiled_out_acc,
                                       dot_kwargs=dot_kwargs)
            scratch_shapes = []
        else:
            kernel = functools.partial(_ffn_kernel_ktiled_scratch,
                                       dot_kwargs=dot_kwargs)
            scratch_shapes = [pltpu.VMEM((tm, D_pad), jnp.float32)]
        dim_sem = ("parallel", "arbitrary")
        w_stream_factor = n_m  # weight slabs re-streamed once per M tile

    w_bytes = (w1p.size * w1p.dtype.itemsize + w2p.size * w2p.dtype.itemsize)
    cost = pl.CostEstimate(
        flops=2 * M_pad * D_pad * F_pad * 2,       # two matmuls
        transcendentals=M_pad * F_pad,             # erf in GELU
        bytes_accessed=(x2d.size * x2d.dtype.itemsize
                        + M_pad * D_pad * o_item
                        + w_bytes * w_stream_factor
                        + b1p.size * 4 + b2p.size * 4),
    )

    out2d = pl.pallas_call(
        kernel,
        out_shape=jax.ShapeDtypeStruct((M_pad, D_pad), out_dtype),
        grid_spec=pltpu.PrefetchScalarGridSpec(
            num_scalar_prefetch=0,
            grid=grid,
            in_specs=in_specs,
            out_specs=out_specs,
            scratch_shapes=scratch_shapes,
        ),
        compiler_params=pltpu.CompilerParams(
            dimension_semantics=dim_sem,
            vmem_limit_bytes=budget,
        ),
        cost_estimate=cost,
    )(x2d, w1p, b1p, w2p, b2p)

    return out2d[:M, :d_model].reshape(*lead, d_model)


def _reference(x, w1, b1, w2, b2):
    h = jnp.dot(x, w1) + b1
    h = h * 0.5 * (1.0 + jax.lax.erf(h / jnp.sqrt(2.0)))
    return jnp.dot(h, w2) + b2


if __name__ == "__main__":
    # Small deterministic setup consistent with the module:
    #   args.d_model = 32  ->  d_ff = 4 * d_model = 128
    batch, seq, d_model = 2, 8, 32
    d_ff = d_model * 4

    key = jax.random.PRNGKey(0)
    kx, kw1, kb1, kw2, kb2 = jax.random.split(key, 5)

    x = jax.random.normal(kx, (batch, seq, d_model), dtype=jnp.float32)

    # Deterministic parameter init (nn.Linear-style uniform bounds).
    bound1 = 1.0 / math.sqrt(d_model)
    w1 = jax.random.uniform(kw1, (d_model, d_ff), jnp.float32, -bound1, bound1)
    b1 = jax.random.uniform(kb1, (d_ff,), jnp.float32, -bound1, bound1)
    bound2 = 1.0 / math.sqrt(d_ff)
    w2 = jax.random.uniform(kw2, (d_ff, d_model), jnp.float32, -bound2, bound2)
    b2 = jax.random.uniform(kb2, (d_model,), jnp.float32, -bound2, bound2)

    # One-time (outside the hot path) weight padding.
    params = prepare_ffn_params(w1, b1, w2, b2)

    out = poswise_ffn(x, *params)
    out = jax.block_until_ready(out)

    ref = _reference(x, w1, b1, w2, b2)
    assert out.shape == (batch, seq, d_model)
    assert jnp.allclose(out, ref, atol=1e-5, rtol=1e-5)

    print("KERNEL_OK")
</pallas_src>

<mosaic_0001>
module attributes {stable_mosaic.version = 11 : i64} {
  func.func @_ffn_kernel_resident(%arg0: i32, %arg1: memref<8x128xf32, #tpu.memory_space<vmem>>, %arg2: memref<128x128xf32, #tpu.memory_space<vmem>>, %arg3: memref<1x128xf32, #tpu.memory_space<vmem>>, %arg4: memref<128x128xf32, #tpu.memory_space<vmem>>, %arg5: memref<1x128xf32, #tpu.memory_space<vmem>>, %arg6: memref<8x128xf32, #tpu.memory_space<vmem>>) attributes {dimension_semantics = [#tpu.dimension_semantics<parallel>], iteration_bounds = array<i64: 2>, scalar_prefetch = 0 : i64, scratch_operands = 0 : i64, tpu.core_type = #tpu.core_type<tc>, window_params = [{transform_indices = @transform_0, window_bounds = array<i64: 8, 128>}, {pipeline_mode = #tpu.pipeline_mode<synchronous>, transform_indices = @transform_1, window_bounds = array<i64: 128, 128>}, {pipeline_mode = #tpu.pipeline_mode<synchronous>, transform_indices = @transform_2, window_bounds = array<i64: 1, 128>}, {pipeline_mode = #tpu.pipeline_mode<synchronous>, transform_indices = @transform_3, window_bounds = array<i64: 128, 128>}, {pipeline_mode = #tpu.pipeline_mode<synchronous>, transform_indices = @transform_4, window_bounds = array<i64: 1, 128>}, {transform_indices = @transform_5, window_bounds = array<i64: 8, 128>}]} {
    %c0 = arith.constant 0 : index
    %c0_0 = arith.constant 0 : index
    %0 = vector.load %arg1[%c0, %c0_0] : memref<8x128xf32, #tpu.memory_space<vmem>>, vector<8x128xf32>
    %c0_1 = arith.constant 0 : index
    %c0_2 = arith.constant 0 : index
    %1 = vector.load %arg2[%c0_1, %c0_2] : memref<128x128xf32, #tpu.memory_space<vmem>>, vector<128x128xf32>
    %cst = arith.constant dense<0.000000e+00> : vector<8x128xf32>
    %2 = tpu.matmul %0, %1, %cst {dimension_numbers = #tpu.dot_dimension_numbers<[1], [0], [0], [1], [0, 0, 1, 1], [], []>} : vector<8x128xf32>, vector<128x128xf32>, vector<8x128xf32> -> vector<8x128xf32>
    %c0_3 = arith.constant 0 : index
    %c0_4 = arith.constant 0 : index
    %3 = vector.load %arg3[%c0_3, %c0_4] : memref<1x128xf32, #tpu.memory_space<vmem>>, vector<1x128xf32>
    %4 = vector.broadcast %3 : vector<1x128xf32> to vector<8x128xf32>
    %5 = arith.addf %2, %4 : vector<8x128xf32>
    %cst_5 = arith.constant 5.000000e-01 : f32
    %6 = vector.broadcast %cst_5 : f32 to vector<8x128xf32>
    %7 = arith.mulf %5, %6 : vector<8x128xf32>
    %cst_6 = arith.constant 0.707106769 : f32
    %8 = vector.broadcast %cst_6 : f32 to vector<8x128xf32>
    %9 = arith.mulf %5, %8 : vector<8x128xf32>
    %10 = math.erf %9 : vector<8x128xf32>
    %cst_7 = arith.constant 1.000000e+00 : f32
    %11 = vector.broadcast %cst_7 : f32 to vector<8x128xf32>
    %12 = arith.addf %11, %10 : vector<8x128xf32>
    %13 = arith.mulf %7, %12 : vector<8x128xf32>
    %c0_8 = arith.constant 0 : index
    %c0_9 = arith.constant 0 : index
    %14 = vector.load %arg4[%c0_8, %c0_9] : memref<128x128xf32, #tpu.memory_space<vmem>>, vector<128x128xf32>
    %cst_10 = arith.constant dense<0.000000e+00> : vector<8x128xf32>
    %15 = tpu.matmul %13, %14, %cst_10 {dimension_numbers = #tpu.dot_dimension_numbers<[1], [0], [0], [1], [0, 0, 1, 1], [], []>} : vector<8x128xf32>, vector<128x128xf32>, vector<8x128xf32> -> vector<8x128xf32>
    %c0_11 = arith.constant 0 : index
    %c0_12 = arith.constant 0 : index
    %16 = vector.load %arg5[%c0_11, %c0_12] : memref<1x128xf32, #tpu.memory_space<vmem>>, vector<1x128xf32>
    %17 = vector.broadcast %16 : vector<1x128xf32> to vector<8x128xf32>
    %18 = arith.addf %15, %17 : vector<8x128xf32>
    %c0_13 = arith.constant 0 : index
    %c0_14 = arith.constant 0 : index
    %19 = vector.load %arg6[%c0_13, %c0_14] : memref<8x128xf32, #tpu.memory_space<vmem>>, vector<8x128xf32>
    tpu.vector_store %arg6[%c0_13, %c0_14], %18 {strides = array<i32>} : memref<8x128xf32, #tpu.memory_space<vmem>>, vector<8x128xf32>,
    return
  }
  func.func @transform_0(%arg0: i32) -> (i32, i32) {
    %c0_i32 = arith.constant 0 : i32
    %c0_i32_0 = arith.constant 0 : i32
    return %arg0, %c0_i32 : i32, i32
  }
  func.func @transform_1(%arg0: i32) -> (i32, i32) {
    %c0_i32 = arith.constant 0 : i32
    %c0_i32_0 = arith.constant 0 : i32
    %c0_i32_1 = arith.constant 0 : i32
    return %c0_i32, %c0_i32_0 : i32, i32
  }
  func.func @transform_2(%arg0: i32) -> (i32, i32) {
    %c0_i32 = arith.constant 0 : i32
    %c0_i32_0 = arith.constant 0 : i32
    %c0_i32_1 = arith.constant 0 : i32
    return %c0_i32, %c0_i32_0 : i32, i32
  }
  func.func @transform_3(%arg0: i32) -> (i32, i32) {
    %c0_i32 = arith.constant 0 : i32
    %c0_i32_0 = arith.constant 0 : i32
    %c0_i32_1 = arith.constant 0 : i32
    return %c0_i32, %c0_i32_0 : i32, i32
  }
  func.func @transform_4(%arg0: i32) -> (i32, i32) {
    %c0_i32 = arith.constant 0 : i32
    %c0_i32_0 = arith.constant 0 : i32
    %c0_i32_1 = arith.constant 0 : i32
    return %c0_i32, %c0_i32_0 : i32, i32
  }
  func.func @transform_5(%arg0: i32) -> (i32, i32) {
    %c0_i32 = arith.constant 0 : i32
    %c0_i32_0 = arith.constant 0 : i32
    return %arg0, %c0_i32 : i32, i32
  }
}

</mosaic_0001>

<bundles_post_ra>
// kernel: poswise_ffn.1
= control target key start
LH: loop header
LB: loop body
LE: loop exit
PB: predicated region body
PF: predicated region fallthrough
CT: control target
= control target key end

     0   :  { %10 = vsyncpa [#allocation3], 0  ;;  %s952_s0 = inlined_call_operand.vmem [shape: f32[16,128], index: 0, kind: input, shape index: {}]   ;;  %s953_s1 = inlined_call_operand.hbm [shape: f32[128,128], index: 1, kind: input, shape index: {}]   ;;  %s954_s2 = inlined_call_operand.vmem [shape: f32[1,128], index: 2, kind: input, shape index: {}]   ;;  %s955_s3 = inlined_call_operand.hbm [shape: f32[128,128], index: 3, kind: input, shape index: {}]   ;;  %s956_s4 = inlined_call_operand.vmem [shape: f32[1,128], index: 4, kind: input, shape index: {}]   ;;  %s957_s5 = inlined_call_operand.vmem [shape: f32[16,128], index: 5, kind: output, shape index: {}]  }
   0x1   :  { %11 = vsyncpa [#allocation5], 0  ;;  %s830_s18 = smov 0  }
   0x2 LB: > { %s836_s19 = sadd.s32 4294967295, %s791_s18   ;;  %p520_p0 = scmp.ge.s32.totalorder %s791_s18, 1  ;;  %s791_s18 = sphi %s830_s18, %s17_s18  }
   0x3   : > { %p158_p1 = scmp.lt.s32.totalorder %s791_s18, 3  ;;  %s793_s20 = smov [#allocation2]  }
   0x4   : > { %s170_s21 = sshll.u32 %s793_s20, 4  ;;  %p958_p3 = scmp.eq.s32.totalorder %s836_s19, 0  ;;  %s171_s21 = int_to_ptr.vmem [resolvable:$true] %s170_s21 }
   0x5   : > { %p840_p2 = pnand %p520_p0, %p158_p1  ;;  %s794_s23 = smov [#allocation4]  }
   0x6   : > { %s186_s24 = sshll.u32 %s794_s23, 4  ;;  %s721_s28 = scalar_lea.hbm %s953_s1, 2048  ;;  %s853_s24 = int_to_ptr.vmem [resolvable:$true] %s186_s24 }
   0x7   : > { %s960_s22 = scalar_select %p840_p2, 1, 0 }
   0x8   : > { %p693_p4 = pneg %p840_p2  ;;  %p722_p6 = scmp.ne.s32.totalorder %s953_s1, %s721_s28 }
   0x9   : > { %p728_p10 = scmp.lt.u32.totalorder %s721_s28, %s953_s1 }
   0xa   : > { %p849_p5 = pnand %p958_p3, %p693_p4 }
   0xc   : > { %p723_p7 = pneg %p849_p5 }
   0xe   : > { %p724_p8 = pnand %p723_p7, %p722_p6 }
  0x10   : > { %p725_p9 = pneg %p724_p8 }
  0x12   : > { %p730_p11 = pnand %p728_p10, %p725_p9 }
  0x14   : > { %733 = shalt.err (!%p730_p11)
}
  0x15   : > { %s734_s8 = scalar_lea.vmem %s171_s21, 2048  ;;  %p742_p1 = scmp.lt.s32.totalorder %s171_s21, %s171_s21 }
  0x16   : > { %p735_p12 = scmp.ne.s32.totalorder %s171_s21, %s734_s8  ;;  %p743_p4 = scmp.lt.s32.totalorder %s734_s8, %s734_s8 }
  0x18   : > { %p737_p13 = pnand %p735_p12, %p723_p7  ;;  %p744_p3 = por %p743_p4, %p742_p1 }
  0x1a   : > { %p738_p0 = pneg %p737_p13 }
  0x1c   : > { %p745_p2 = pnand %p744_p3, %p738_p0 }
  0x1e   : > { %748 = shalt.err (!%p745_p2)
}
  0x1f   : > { %s795_s9 = smov 128   ;;  %s796_s10 = smov 8  }
  0x20   : > { %696 = dma.hbm_to_vmem [thread:$0]  (!%p849_p5), %s953_s1, 2048, %s171_s21, [#allocation3], %s795_s9, %s795_s9, %s796_s10  }
  0x21   : > { %s749_s15 = scalar_lea.hbm %s955_s3, 2048 }
  0x22   : > { %p750_p6 = scmp.ne.s32.totalorder %s955_s3, %s749_s15  ;;  %p756_p8 = scmp.lt.u32.totalorder %s749_s15, %s955_s3 }
  0x24   : > { %p752_p2 = pnand %p750_p6, %p723_p7 }
  0x26   : > { %p753_p3 = pneg %p752_p2 }
  0x28   : > { %p758_p9 = pnand %p756_p8, %p753_p3 }
  0x2a   : > { %761 = shalt.err (!%p758_p9)
}
  0x2b   : > { %s762_s21 = scalar_lea.vmem %s853_s24, 2048  ;;  %p770_p13 = scmp.lt.s32.totalorder %s853_s24, %s853_s24 }
  0x2c   : > { %p763_p10 = scmp.ne.s32.totalorder %s853_s24, %s762_s21  ;;  %p771_p0 = scmp.lt.s32.totalorder %s762_s21, %s762_s21 }
  0x2e   : > { %p765_p11 = pnand %p763_p10, %p723_p7  ;;  %p772_p1 = por %p771_p0, %p770_p13 }
  0x30   : > { %p766_p12 = pneg %p765_p11 }
  0x32   : > { %p773_p4 = pnand %p772_p1, %p766_p12 }
  0x34   : > { %776 = shalt.err (!%p773_p4)
}
  0x35   : > { %699 = dma.hbm_to_vmem [thread:$0]  (!%p849_p5), %s955_s3, 2048, %s853_s24, [#allocation5], %s795_s9, %s795_s9, %s796_s10  }
  0x36   : > { %p962_p6 = scmp.ne.s32.totalorder %s960_s22, 0 }
  0x37   : > { %p963_p2 = scmp.eq.s32.totalorder (!%p962_p6), %s836_s19, 0 }
  0x38   : > { %212 = sbr.rel (%p962_p6) target bundleno = 547 (0x223), region = 40 }
  0x3f   : > { %782 = dma.done.wait (%p963_p2), [#allocation3], 2048   ;;  %p964_p7 = pmov %p963_p2 }
  0x40   : > { %p965_p3 = pmov %p963_p2 }
  0x41   : > { %784 = vsyncadd (%p964_p7), [#allocation3], 4294965248 }
  0x42   : > { %786 = dma.done.wait (%p965_p3), [#allocation5], 2048   ;;  %p966_p8 = pmov %p963_p2 }
  0x43   : > { %v797_v0 = vmov 0.0|0.0   ;;  %vm798_vm0 = vmmov 0   ;;  %v799_v1 = vmov 0.0   ;;  %v251_v2 = vld [vmem:[#allocation2] sm:$0xff]  ;;  %v252_v3 = vld [vmem:[#allocation2 + $0x8] sm:$0xff]  ;;  %v253_v4 = vld [vmem:[#allocation2 + $0x10] sm:$0xff] }
  0x44   : > { %788 = vsyncadd (%p966_p8), [#allocation5], 4294965248  ;;  %637 = vmatprep.subr.bf16.mxu0 %v797_v0  ;;  %599 = vmatprep.mubr.msk.f32.mxu0 %vm798_vm0, %v799_v1  ;;  %v638_v5 = vpack.c.bf16 %v252_v3, %v251_v2  ;;  %v254_v6 = vld [vmem:[#allocation2 + $0x18] sm:$0xff]  ;;  %v255_v8 = vld [vmem:[#allocation2 + $0x20] sm:$0xff]  ;;  %p242_p5 = scmp.lt.s32.totalorder %s836_s19, 1 }
  0x45   : > { %661 = vmatprep.subr.bf16.mxu1 %v797_v0  ;;  %634 = vmatprep.mubr.msk.f32.mxu1 %vm798_vm0, %v799_v1  ;;  %v641_v7 = vpack.c.bf16 %v254_v6, %v253_v4  ;;  %v256_v9 = vld [vmem:[#allocation2 + $0x28] sm:$0xff]  ;;  %v349_v10 = vld [vmem:[#allocation4] sm:$0xff]  ;;  %v351_v12 = vld [vmem:[#allocation4 + $0x10] sm:$0xff] }
  0x46   : > { %639 = vmatpush3.bf16.msra.mxu0 %v638_v5  ;;  %v350_v11 = vld [vmem:[#allocation4 + $0x8] sm:$0xff]  ;;  %v352_v13 = vld [vmem:[#allocation4 + $0x18] sm:$0xff]  ;;  %v644_v14 = vpack.c.bf16 %v256_v9, %v255_v8  ;;  %v257_v16 = vld [vmem:[#allocation2 + $0x30] sm:$0xff]  ;;  %s968_s19 = smov (!%p242_p5, %s836_s19), 1 }
  0x47   : > { %640 = vmatprep.subr.bf16.mxu0 %v797_v0  ;;  %v662_v15 = vpack.c.bf16 %v350_v11, %v349_v10  ;;  %v258_v17 = vld [vmem:[#allocation2 + $0x38] sm:$0xff]  ;;  %v665_v18 = vpack.c.bf16 %v352_v13, %v351_v12  ;;  %v353_v19 = vld [vmem:[#allocation4 + $0x20] sm:$0xff]  ;;  %v354_v20 = vld [vmem:[#allocation4 + $0x28] sm:$0xff]  ;;  %s527_s22 = sshll.u32 %s968_s19, 3 }
  0x48   : > { %v647_v21 = vpack.c.bf16 %v258_v17, %v257_v16  ;;  %v259_v22 = vld [vmem:[#allocation2 + $0x40] sm:$0xff]  ;;  %v260_v23 = vld [vmem:[#allocation2 + $0x48] sm:$0xff]  ;;  %v668_v24 = vpack.c.bf16 %v354_v20, %v353_v19  ;;  %v261_v26 = vld [vmem:[#allocation2 + $0x50] sm:$0xff]  ;;  %s245_s28 = scalar_lea.vmem %s952_s0, %s527_s22  ;;  %s249_s10 = scalar_lea.vmem %s957_s5, %s527_s22 }
  0x49   : > { %663 = vmatpush3.bf16.msra.mxu1 %v662_v15  ;;  %v650_v25 = vpack.c.bf16 %v260_v23, %v259_v22  ;;  %v262_v27 = vld [vmem:[#allocation2 + $0x58] sm:$0xff]  ;;  %v263_v29 = vld [vmem:[#allocation2 + $0x60] sm:$0xff]  ;;  %v264_v30 = vld [vmem:[#allocation2 + $0x68] sm:$0xff] }
  0x4a   : > { %642 = vmatpush3.bf16.msra.mxu0 %v641_v7  ;;  %664 = vmatprep.subr.bf16.mxu1 %v797_v0  ;;  %v653_v28 = vpack.c.bf16 %v262_v27, %v261_v26  ;;  %v656_v31 = vpack.c.bf16 %v264_v30, %v263_v29  ;;  %v265_v32 = vld [vmem:[#allocation2 + $0x70] sm:$0xff]  ;;  %v266_v33 = vld [vmem:[#allocation2 + $0x78] sm:$0xff]  ;;  %v250_v35 = vld [vmem:[%s245_s28] sm:$0xff] }
  0x4b   : > { %643 = vmatprep.subr.bf16.mxu0 %v797_v0  ;;  %v659_v34 = vpack.c.bf16 %v266_v33, %v265_v32  ;;  %v355_v36 = vld [vmem:[#allocation4 + $0x30] sm:$0xff]  ;;  %v356_v37 = vld [vmem:[#allocation4 + $0x38] sm:$0xff]  ;;  %v357_v39 = vld [vmem:[#allocation4 + $0x40] sm:$0xff] }
  0x4c   : > { %v671_v38 = vpack.c.bf16 %v356_v37, %v355_v36  ;;  %v358_v40 = vld [vmem:[#allocation4 + $0x48] sm:$0xff]  ;;  %v359_v42 = vld [vmem:[#allocation4 + $0x50] sm:$0xff]  ;;  %v360_v43 = vld [vmem:[#allocation4 + $0x58] sm:$0xff] }
  0x4d   : > { %666 = vmatpush3.bf16.msra.mxu1 %v665_v18  ;;  %v674_v41 = vpack.c.bf16 %v358_v40, %v357_v39  ;;  %v677_v44 = vpack.c.bf16 %v360_v43, %v359_v42  ;;  %v361_v45 = vld [vmem:[#allocation4 + $0x60] sm:$0xff]  ;;  %v362_v46 = vld [vmem:[#allocation4 + $0x68] sm:$0xff]  ;;  %v363_v48 = vld [vmem:[#allocation4 + $0x70] sm:$0xff] }
  0x4e   : > { %645 = vmatpush3.bf16.msra.mxu0 %v644_v14  ;;  %667 = vmatprep.subr.bf16.mxu1 %v797_v0  ;;  %v680_v47 = vpack.c.bf16 %v362_v46, %v361_v45  ;;  %v364_v49 = vld [vmem:[#allocation4 + $0x78] sm:$0xff]  ;;  %v529_v51 = vld [vmem:[%s954_s2] ss:$0 sm:$0xff] }
  0x4f   : > { %646 = vmatprep.subr.bf16.mxu0 %v797_v0  ;;  %v683_v50 = vpack.c.bf16 %v364_v49, %v363_v48  ;;  %v530_v60 = vld [vmem:[%s956_s4] ss:$0 sm:$0xff] }
  0x51   : > { %669 = vmatpush3.bf16.msra.mxu1 %v668_v24 }
  0x52   : > { %648 = vmatpush3.bf16.msra.mxu0 %v647_v21  ;;  %670 = vmatprep.subr.bf16.mxu1 %v797_v0 }
  0x53   : > { %649 = vmatprep.subr.bf16.mxu0 %v797_v0 }
  0x55   : > { %672 = vmatpush3.bf16.msra.mxu1 %v671_v38 }
  0x56   : > { %651 = vmatpush3.bf16.msra.mxu0 %v650_v25  ;;  %673 = vmatprep.subr.bf16.mxu1 %v797_v0 }
  0x57   : > { %652 = vmatprep.subr.bf16.mxu0 %v797_v0 }
  0x59   : > { %675 = vmatpush3.bf16.msra.mxu1 %v674_v41 }
  0x5a   : > { %654 = vmatpush3.bf16.msra.mxu0 %v653_v28  ;;  %676 = vmatprep.subr.bf16.mxu1 %v797_v0 }
  0x5b   : > { %655 = vmatprep.subr.bf16.mxu0 %v797_v0 }
  0x5d   : > { %678 = vmatpush3.bf16.msra.mxu1 %v677_v44 }
  0x5e   : > { %657 = vmatpush3.bf16.msra.mxu0 %v656_v31  ;;  %679 = vmatprep.subr.bf16.mxu1 %v797_v0 }
  0x5f   : > { %658 = vmatprep.subr.bf16.mxu0 %v797_v0 }
  0x61   : > { %681 = vmatpush3.bf16.msra.mxu1 %v680_v47 }
  0x62   : > { %660 = vmatpush3.bf16.msra.mxu0 %v659_v34  ;;  %682 = vmatprep.subr.bf16.mxu1 %v797_v0 }
  0x65   : > { %600 = vmatmul.mubr.f32.vlgmr.msra.gmra.mrb[0].mxu0 %v250_v35  ;;  %684 = vmatpush3.bf16.msra.mxu1 %v683_v50 }
 0x138   : > { %v340_v52 = vpop.f32.mrb[0].mxu0 }
 0x139   : > { %v341_v53 = vadd.f32 %v529_v51, %v340_v52  ;;  %v601_v54 = vpop.f32.mrb[1].mxu0 }
 0x13b   : > { %v345_v55 = vmul.f32 0.70710677, %v341_v53  ;;  %v344_v57 = vmul.f32 0.5, %v341_v53 }
 0x13d   : > { %719 = verf.f32 %v345_v55 }
 0x147   : > { %v720_v56 = vpop.eup %719 }
 0x148   : > { %v347_v58 = vadd.f32 1.0, %v720_v56 }
 0x14a   : > { %v348_v59 = vmul.f32 %v347_v58, %v344_v57 }
 0x14c   : > { %635 = vmatmul.mubr.f32.vlgmr.msra.gmra.mrb[0].mxu1 %v348_v59 }
 0x21f   : > { %v438_v61 = vpop.f32.mrb[0].mxu1 }
 0x220   : > { %v439_v62 = vadd.f32 %v530_v60, %v438_v61  ;;  %v636_v63 = vpop.f32.mrb[1].mxu1 }
 0x222   : > { %442 = vst [vmem:[%s249_s10] sm:$0xff] %v439_v62 }
 0x223 PF: > { %s17_s18 = sadd.s32 1, %s791_s18  }
 0x224   : > { %p14_p9 = scmp.ge.s32.totalorder %s17_s18, 4  }
 0x226   :  { %16 = sbr.rel (!%p14_p9) target bundleno = 2 (0x2), region = 79 }
 0x22d   :  { %462 = vsyncpa [#allocation3], 1 }
 0x22e   :  { %464 = vsyncpa [#allocation3 + $0x1], 1 }
 0x22f   :  { %465 = vsyncpa [#allocation5], 1 }

</bundles_post_ra>
